<compile_context>
chip_gen: v6e
topology: v6e:2x2x1
jax: 0.10.0
libtpu: 0.0.40
codegen_flags: <defaults>
</compile_context>

<pallas_src>
import jax
import jax.numpy as jnp
from jax.experimental import pallas as pl
from jax.experimental.pallas import tpu as pltpu

_PER_BLOCK_BUDGET = 8 * 1024 * 1024   # bytes per block; ~4 pipelined buffers => ~32 MiB
_VMEM_LIMIT = 48 << 20                # > v5e 16 MiB default, headroom on v7x 64 MiB
_LANE = 128


def _identity_copy_kernel(x_ref, o_ref):
    # Identity forward: copy the current block unchanged.
    o_ref[...] = x_ref[...]


def _round_up(n, m):
    return ((n + m - 1) // m) * m


def _native_sublane(dtype):
    # f32 -> 8, bf16/f16 -> 16, int8/fp8 -> 32 rows per sublane tile.
    return max(8, 32 // jnp.dtype(dtype).itemsize)


def _copy_2d(x2):
    """Lane-dense copy of a (R, W) slab, W a multiple of 128."""
    R, W = x2.shape
    itemsize = x2.dtype.itemsize

    # Largest block (rows) that fits the per-block budget; multiple of 8
    # (sublane) unless it spans the whole R axis.
    br = max(1, _PER_BLOCK_BUDGET // (W * itemsize))
    if br >= R:
        br = R
        # v7x: keep >= 2 parallel steps when there is enough data so both
        # TensorCores stream.  Neutral on v5e/v6e (single TC).
        if R >= 16:
            half = _round_up(pl.cdiv(R, 2), 8)
            if half < R:
                br = half
    else:
        br = max(8, (br // 8) * 8)

    grid = (pl.cdiv(R, br),)
    return pl.pallas_call(
        _identity_copy_kernel,
        out_shape=jax.ShapeDtypeStruct((R, W), x2.dtype),
        grid=grid,
        in_specs=[pl.BlockSpec((br, W), lambda i: (i, 0))],
        out_specs=pl.BlockSpec((br, W), lambda i: (i, 0)),
        input_output_aliases={0: 0},
        cost_estimate=pl.CostEstimate(
            flops=0, transcendentals=0, bytes_accessed=2 * R * W * itemsize),
        compiler_params=pltpu.CompilerParams(
            dimension_semantics=("parallel",),
            vmem_limit_bytes=_VMEM_LIMIT),
    )(x2)


def _copy_3d(x):
    """Fallback: block over batch rows with full (S, D) trailing dims."""
    B, S, D = x.shape
    itemsize = x.dtype.itemsize

    # Padding-aware per-batch-row VMEM footprint (D padded to 128 lanes,
    # S padded to the dtype's sublane count).
    sub = _native_sublane(x.dtype)
    padded_bytes_per_row = _round_up(S, sub) * _round_up(D, _LANE) * itemsize

    rows = max(1, min(B, _PER_BLOCK_BUDGET // padded_bytes_per_row))
    if rows == B and B >= 2:
        rows = pl.cdiv(B, 2)          # keep >= 2 parallel steps for v7x
    grid = (pl.cdiv(B, rows),)        # partial last block handled by Pallas

    return pl.pallas_call(
        _identity_copy_kernel,
        out_shape=jax.ShapeDtypeStruct((B, S, D), x.dtype),
        grid=grid,
        # Last two block dims equal the full array dims -> (8, 128) rule OK
        # for any seq_len / num_in_dim.
        in_specs=[pl.BlockSpec((rows, S, D), lambda i: (i, 0, 0))],
        out_specs=pl.BlockSpec((rows, S, D), lambda i: (i, 0, 0)),
        input_output_aliases={0: 0},
        cost_estimate=pl.CostEstimate(
            flops=0, transcendentals=0, bytes_accessed=2 * B * S * D * itemsize),
        compiler_params=pltpu.CompilerParams(
            dimension_semantics=("parallel",),
            vmem_limit_bytes=_VMEM_LIMIT),
    )(x)


def encoder_forward(x, *, elide_copy=False):
    """Encoder.forward: (B, S, D) -> (B, S, D), values unchanged.

    elide_copy=True is the zero-cost path (the identity needs no kernel);
    otherwise a tuned pass-through Pallas copy runs.
    """
    if elide_copy:
        return x

    B, S, D = x.shape
    total = B * S * D

    # Prefer a lane-dense 2D view: pick the largest W (multiple of 128,
    # <= 8192) that divides the element count.
    W = 0
    for cand in (8192, 4096, 2048, 1024, 512, 384, 256, 128):
        if total % cand == 0:
            W = cand
            break

    if W:
        out2 = _copy_2d(x.reshape(total // W, W))
        return out2.reshape(B, S, D)
    return _copy_3d(x)


if __name__ == "__main__":
    # Small shapes consistent with the module: (batch, seq_len, num_in_dim).
    batch, seq_len, num_in_dim = 2, 8, 32

    key = jax.random.PRNGKey(0)
    x = jax.random.normal(key, (batch, seq_len, num_in_dim), jnp.float32)

    out = encoder_forward(x)
    out = jax.block_until_ready(out)

    # Compare against a freshly generated (identical) reference so the check
    # is independent of any buffer aliasing on x.
    expected = jax.random.normal(jax.random.PRNGKey(0),
                                 (batch, seq_len, num_in_dim), jnp.float32)

    assert out.shape == (batch, seq_len, num_in_dim), out.shape
    assert out.dtype == x.dtype, out.dtype
    assert jnp.array_equal(out, expected), "Encoder identity kernel altered its input"

    print("KERNEL_OK")
</pallas_src>

<mosaic_0001>
module attributes {stable_mosaic.version = 11 : i64} {
  func.func @_identity_copy_kernel(%arg0: i32, %arg1: memref<1x512xf32, #tpu.memory_space<vmem>>, %arg2: memref<1x512xf32, #tpu.memory_space<vmem>>) attributes {dimension_semantics = [#tpu.dimension_semantics<parallel>], iteration_bounds = array<i64: 1>, scalar_prefetch = 0 : i64, scratch_operands = 0 : i64, tpu.core_type = #tpu.core_type<tc>, window_params = [{transform_indices = @transform_0, window_bounds = array<i64: 1, 512>}, {transform_indices = @transform_1, window_bounds = array<i64: 1, 512>}]} {
    %c0 = arith.constant 0 : index
    %c0_0 = arith.constant 0 : index
    %0 = vector.load %arg1[%c0, %c0_0] : memref<1x512xf32, #tpu.memory_space<vmem>>, vector<1x512xf32>
    %c0_1 = arith.constant 0 : index
    %c0_2 = arith.constant 0 : index
    %1 = vector.load %arg2[%c0_1, %c0_2] : memref<1x512xf32, #tpu.memory_space<vmem>>, vector<1x512xf32>
    tpu.vector_store %arg2[%c0_1, %c0_2], %0 {strides = array<i32>} : memref<1x512xf32, #tpu.memory_space<vmem>>, vector<1x512xf32>,
    return
  }
  func.func @transform_0(%arg0: i32) -> (i32, i32) {
    %c0_i32 = arith.constant 0 : i32
    %c0_i32_0 = arith.constant 0 : i32
    return %arg0, %c0_i32 : i32, i32
  }
  func.func @transform_1(%arg0: i32) -> (i32, i32) {
    %c0_i32 = arith.constant 0 : i32
    %c0_i32_0 = arith.constant 0 : i32
    return %arg0, %c0_i32 : i32, i32
  }
}

</mosaic_0001>

<bundles_post_ra>
// kernel: tpu_custom_call.1
= control target key start
LH: loop header
LB: loop body
LE: loop exit
PB: predicated region body
PF: predicated region fallthrough
CT: control target
= control target key end

     0   :  { %6 = vsyncpa [#allocation3], 0  ;;  %s106_s0 = inlined_call_operand.hbm [shape: f32[1,512], index: 0, kind: input, shape index: {}, may-alias: {0,1}]   ;;  %s107_s1 = inlined_call_operand.hbm [shape: f32[1,512], index: 1, kind: output, shape index: {}, may-alias: {0,1}]  }
   0x1   :  { %7 = vsyncpa [#allocation4], 0  ;;  %s88_s6 = smov [#allocation2]  }
   0x2   :  { %s14_s7 = sshll.u32 %s88_s6, 4  ;;  %s15_s7 = int_to_ptr.vmem [resolvable:$true] %s14_s7 }
   0x3   :  { %s52_s8 = scalar_lea.vmem %s15_s7, 64  ;;  %p57_p1 = scmp.lt.s32.totalorder %s15_s7, %s15_s7 }
   0x4   :  { %p53_p0 = scmp.ne.s32.totalorder %s15_s7, %s52_s8  ;;  %p58_p2 = scmp.lt.s32.totalorder %s52_s8, %s52_s8 }
   0x6   :  { %p59_p3 = por %p58_p2, %p57_p1 }
   0x8   :  { %p60_p4 = pnand %p59_p3, %p53_p0 }
   0xa   :  { %63 = shalt.err (!%p60_p4)
}
   0xb   :  { %17 = dma.hbm_to_vmem [thread:$0]  %s106_s0, 64, %s15_s7, [#allocation3]  }
   0xc   :  { %84 = dma.done.wait [#allocation3], 64  }
   0xd   :  { %85 = vsyncadd [#allocation3], 4294967232  ;;  %v22_v0 = vlaneseq  ;;  %s89_s11 = smov [#allocation5]   ;;  %v21_v1 = vld [vmem:[#allocation2] sm:$0xf] }
   0xe   :  { %s33_s12 = sshll.u32 %s89_s11, 4  ;;  %s34_s12 = int_to_ptr.vmem [resolvable:$true] %s33_s12 }
   0xf   :  { %vm24_vm0 = vcmp.lt.s32.totalorder %v22_v0, 512  ;;  %s64_s13 = scalar_lea.vmem %s34_s12, 64  ;;  %p69_p6 = scmp.lt.s32.totalorder %s34_s12, %s34_s12 }
  0x10   :  { %26 = vst.msk [vmem:[#allocation5] sm:$0xf] %vm24_vm0, %v21_v1  ;;  %p65_p5 = scmp.ne.s32.totalorder %s34_s12, %s64_s13  ;;  %p70_p7 = scmp.lt.s32.totalorder %s64_s13, %s64_s13 }
  0x12   :  { %p71_p8 = por %p70_p7, %p69_p6 }
  0x14   :  { %p72_p9 = pnand %p71_p8, %p65_p5 }
  0x16   :  { %75 = shalt.err (!%p72_p9)
}
  0x17   :  { %36 = dma.vmem_to_hbm [thread:$0]  %s34_s12, 64, %s107_s1, [#allocation4]  }
  0x18   :  { %86 = dma.done.wait [#allocation4], 64  }
  0x19   :  { %87 = vsyncadd [#allocation4], 4294967232 }
  0x1a   :  { %40 = vsyncpa [#allocation3], 1 }
  0x1b   :  { %41 = vsyncpa [#allocation4], 1 }

</bundles_post_ra>
